<compile_context>
chip_gen: v7x
topology: tpu7x:2x2x1
jax: 0.10.0
libtpu: 0.0.40
codegen_flags: <defaults>
</compile_context>

<pallas_src>
import math
import jax
import jax.numpy as jnp
from jax.experimental import pallas as pl
from jax.experimental.pallas import tpu as pltpu

BN_EPS = 1e-5
LANE = 128


def _round_up(v, m):
    return ((v + m - 1) // m) * m


def _linkx_kernel(a_ref, x_ref,
                  w_edge_ref, w_node_ref, b_comb_ref,
                  w_f0_ref, b_f0_ref,
                  w_f1_ref, b_f1_ref,
                  out_ref, acc_ref):
    f32 = jnp.float32
    k = pl.program_id(1)

    @pl.when(k == 0)
    def _():
        acc_ref[...] = jnp.zeros_like(acc_ref)

    # Partial H_A accumulation over the contraction (node) dimension.
    # A is bf16 in HBM (exact integers <= 256); upcast in-VMEM, accumulate in f32.
    acc_ref[...] += jnp.dot(a_ref[...].astype(f32), w_edge_ref[...],
                            preferred_element_type=f32)

    @pl.when(k == pl.num_programs(1) - 1)
    def _():
        # out = A @ W_edge' + x @ W_node' + b'   (cat_lin1 / cat_lin2 folded in)
        out = (acc_ref[...]
               + jnp.dot(x_ref[...], w_node_ref[...], preferred_element_type=f32)
               + b_comb_ref[...])
        # final_mlp: channels [H, H, C], relu_first=True.
        # Eval-mode BatchNorm scale 1/sqrt(1+eps) is pre-folded into w_f1.
        z = jnp.maximum(out, 0.0)
        z = jnp.dot(z, w_f0_ref[...], preferred_element_type=f32) + b_f0_ref[...]
        z = jnp.maximum(z, 0.0)                    # relu_first; dropout is a no-op in eval
        y = jnp.dot(z, w_f1_ref[...], preferred_element_type=f32) + b_f1_ref[...]
        out_ref[...] = y.astype(out_ref.dtype)


def inductive_linkx_forward(a_dense, x, params, *, tile_m=128, tile_k=256):
    """Fused forward. a_dense: (N, N), x: (N, F) float32 -> (N, C) float32."""
    N = a_dense.shape[0]
    F = x.shape[1]
    H = params["w_edge"].shape[1]
    C = params["w_f1"].shape[1]

    # Tile sizes + host-side zero padding so arbitrary N works.
    tile_m = min(tile_m, _round_up(N, 8))
    m_pad = _round_up(N, tile_m)
    tile_k = min(tile_k, _round_up(N, LANE))
    k_pad = _round_up(N, tile_k)

    # ---- host-side folds (exact algebra, done once per parameter set) ----
    eye = jnp.eye(H, dtype=jnp.float32)
    m1 = eye + params["w_c1"]          # out = h_a + cat_lin1(h_a) == h_a @ (I + W_c1) + b_c1
    m2 = eye + params["w_c2"]
    w_edge_f = params["w_edge"] @ m1                                      # (N, H)
    w_node_f = params["w_node"] @ m2                                      # (F, H)
    b_comb = (params["b_edge"] @ m1 + params["b_c1"]
              + params["b_node"] @ m2 + params["b_c2"])                   # (1, H)
    bn_scale = 1.0 / math.sqrt(1.0 + BN_EPS)
    w_f1_f = params["w_f1"] * bn_scale                                    # (H, C)

    # Lane-dense output: pad C up to a multiple of 128 and slice outside the kernel.
    c_pad = _round_up(C, LANE)
    w_f1_p = jnp.zeros((H, c_pad), jnp.float32).at[:, :C].set(w_f1_f)
    b_f1_p = jnp.zeros((1, c_pad), jnp.float32).at[:, :C].set(params["b_f1"])

    # bf16 A halves the dominant N^2 HBM stream; exact for integer edge counts <= 256.
    # (Do NOT use int8 A on v7x: no integer MXU path there.)
    a_bf16 = a_dense.astype(jnp.bfloat16)
    if m_pad != N or k_pad != N:
        a_bf16 = jnp.pad(a_bf16, ((0, m_pad - N), (0, k_pad - N)))
    x_p = jnp.pad(x, ((0, m_pad - N), (0, 0))) if m_pad != N else x
    w_edge_p = (jnp.pad(w_edge_f, ((0, k_pad - N), (0, 0)))
                if k_pad != N else w_edge_f)

    grid = (m_pad // tile_m, k_pad // tile_k)   # (row tiles [parallel], K tiles [arbitrary])

    out_pad = pl.pallas_call(
        _linkx_kernel,
        out_shape=jax.ShapeDtypeStruct((m_pad, c_pad), jnp.float32),
        grid_spec=pltpu.PrefetchScalarGridSpec(
            num_scalar_prefetch=0,
            grid=grid,
            in_specs=[
                pl.BlockSpec((tile_m, tile_k), lambda i, k: (i, k)),   # A row x K tile
                pl.BlockSpec((tile_m, F), lambda i, k: (i, 0)),        # x rows
                pl.BlockSpec((tile_k, H), lambda i, k: (k, 0)),        # W_edge' K-slice
                pl.BlockSpec((F, H), lambda i, k: (0, 0)),             # W_node' (folded)
                pl.BlockSpec((1, H), lambda i, k: (0, 0)),             # combined bias
                pl.BlockSpec((H, H), lambda i, k: (0, 0)),             # final_mlp lin0 W
                pl.BlockSpec((1, H), lambda i, k: (0, 0)),             # final_mlp lin0 b
                pl.BlockSpec((H, c_pad), lambda i, k: (0, 0)),         # final_mlp lin1 W (BN folded, padded)
                pl.BlockSpec((1, c_pad), lambda i, k: (0, 0)),         # final_mlp lin1 b (padded)
            ],
            out_specs=pl.BlockSpec((tile_m, c_pad), lambda i, k: (i, 0)),
            scratch_shapes=[pltpu.VMEM((tile_m, H), jnp.float32)],     # f32 H_A accumulator
        ),
        compiler_params=pltpu.CompilerParams(
            dimension_semantics=("parallel", "arbitrary"),
            vmem_limit_bytes=32 * 1024 * 1024,
        ),
    )(a_bf16, x_p, w_edge_p, w_node_f, b_comb,
      params["w_f0"], params["b_f0"], w_f1_p, b_f1_p)

    return out_pad[:N, :C]


def _reference(a_dense, x, p):
    """Pure-JAX reference of the original (unfolded) forward, f32 throughout."""
    h_a = a_dense @ p["w_edge"] + p["b_edge"]
    out = h_a + h_a @ p["w_c1"] + p["b_c1"]
    h_x = x @ p["w_node"] + p["b_node"]
    out = out + h_x + h_x @ p["w_c2"] + p["b_c2"]
    z = jnp.maximum(out, 0.0)
    z = z @ p["w_f0"] + p["b_f0"]
    z = jnp.maximum(z, 0.0) / jnp.sqrt(1.0 + BN_EPS)
    return z @ p["w_f1"] + p["b_f1"]


def _init_params(key, num_nodes, in_channels, hidden, out_channels):
    """Deterministic synthetic parameters (torch-Linear shapes, pre-transposed to (in, out))."""
    ks = jax.random.split(key, 16)

    def lin(kw, kb, fan_in, fan_out):
        bound = 1.0 / math.sqrt(fan_in)
        w = jax.random.uniform(kw, (fan_in, fan_out), jnp.float32, -bound, bound)
        b = jax.random.uniform(kb, (1, fan_out), jnp.float32, -bound, bound)
        return w, b

    w_edge, b_edge = lin(ks[0], ks[1], num_nodes, hidden)     # SparseLinear (N, H)
    w_c1, b_c1 = lin(ks[2], ks[3], hidden, hidden)            # cat_lin1
    w_node, b_node = lin(ks[4], ks[5], in_channels, hidden)   # node_mlp (1 layer)
    w_c2, b_c2 = lin(ks[6], ks[7], hidden, hidden)            # cat_lin2
    w_f0, b_f0 = lin(ks[8], ks[9], hidden, hidden)            # final_mlp lin0
    w_f1, b_f1 = lin(ks[10], ks[11], hidden, out_channels)    # final_mlp lin1
    return dict(w_edge=w_edge, b_edge=b_edge, w_c1=w_c1, b_c1=b_c1,
                w_node=w_node, b_node=b_node, w_c2=w_c2, b_c2=b_c2,
                w_f0=w_f0, b_f0=b_f0, w_f1=w_f1, b_f1=b_f1)


if __name__ == "__main__":
    num_nodes, in_channels, hidden, out_channels = 512, 16, 32, 8
    num_edges = 2048

    key = jax.random.PRNGKey(0)
    k_param, k_x, k_src, k_dst = jax.random.split(key, 4)

    params = _init_params(k_param, num_nodes, in_channels, hidden, out_channels)
    x = jax.random.normal(k_x, (num_nodes, in_channels), jnp.float32)

    # edge_index: (2, E) with row 0 = src, row 1 = dst; densify to A[dst, src] += 1.
    # TODO(synk): for realistic sparse graphs (E << N^2) a CSR gather-based SparseLinear
    #             (scalar-prefetch row offsets) would replace this O(N^2) dense A stream.
    src = jax.random.randint(k_src, (num_edges,), 0, num_nodes)
    dst = jax.random.randint(k_dst, (num_edges,), 0, num_nodes)
    a_dense = jnp.zeros((num_nodes, num_nodes), jnp.float32).at[dst, src].add(1.0)
    assert float(a_dense.max()) <= 256.0  # bf16-exact edge counts

    y = inductive_linkx_forward(a_dense, x, params, tile_m=128, tile_k=256)
    y = jax.block_until_ready(y)

    y_ref = _reference(a_dense, x, params)
    assert y.shape == (num_nodes, out_channels)
    assert jnp.allclose(y, y_ref, atol=1e-4, rtol=1e-4), "mismatch vs JAX reference"

    print("KERNEL_OK")
</pallas_src>

<mosaic_0001>
module attributes {stable_mosaic.version = 11 : i64} {
  func.func @_linkx_kernel(%arg0: i32, %arg1: i32, %arg2: memref<128x256xbf16, #tpu.memory_space<vmem>>, %arg3: memref<128x16xf32, #tpu.memory_space<vmem>>, %arg4: memref<256x32xf32, #tpu.memory_space<vmem>>, %arg5: memref<16x32xf32, #tpu.memory_space<vmem>>, %arg6: memref<1x32xf32, #tpu.memory_space<vmem>>, %arg7: memref<32x32xf32, #tpu.memory_space<vmem>>, %arg8: memref<1x32xf32, #tpu.memory_space<vmem>>, %arg9: memref<32x128xf32, #tpu.memory_space<vmem>>, %arg10: memref<1x128xf32, #tpu.memory_space<vmem>>, %arg11: memref<128x128xf32, #tpu.memory_space<vmem>>, %arg12: memref<128x32xf32, #tpu.memory_space<vmem>>) attributes {dimension_semantics = [#tpu.dimension_semantics<parallel>, #tpu.dimension_semantics<arbitrary>], iteration_bounds = array<i64: 4, 2>, scalar_prefetch = 0 : i64, scratch_operands = 1 : i64, tpu.core_type = #tpu.core_type<tc>, window_params = [{transform_indices = @transform_0, window_bounds = array<i64: 128, 256>}, {transform_indices = @transform_1, window_bounds = array<i64: 128, 16>}, {transform_indices = @transform_2, window_bounds = array<i64: 256, 32>}, {pipeline_mode = #tpu.pipeline_mode<synchronous>, transform_indices = @transform_3, window_bounds = array<i64: 16, 32>}, {pipeline_mode = #tpu.pipeline_mode<synchronous>, transform_indices = @transform_4, window_bounds = array<i64: 1, 32>}, {pipeline_mode = #tpu.pipeline_mode<synchronous>, transform_indices = @transform_5, window_bounds = array<i64: 32, 32>}, {pipeline_mode = #tpu.pipeline_mode<synchronous>, transform_indices = @transform_6, window_bounds = array<i64: 1, 32>}, {pipeline_mode = #tpu.pipeline_mode<synchronous>, transform_indices = @transform_7, window_bounds = array<i64: 32, 128>}, {pipeline_mode = #tpu.pipeline_mode<synchronous>, transform_indices = @transform_8, window_bounds = array<i64: 1, 128>}, {transform_indices = @transform_9, window_bounds = array<i64: 128, 128>}]} {
    %c0_i32 = arith.constant 0 : i32
    %0 = arith.cmpi eq, %arg1, %c0_i32 : i32
    %1 = arith.extui %0 : i1 to i32
    %c0_i32_0 = arith.constant 0 : i32
    %2 = arith.cmpi ne, %1, %c0_i32_0 : i32
    scf.if %2 {
      %cst_9 = arith.constant 0.000000e+00 : f32
      %13 = vector.broadcast %cst_9 : f32 to vector<128x32xf32>
      %c0_10 = arith.constant 0 : index
      %c0_11 = arith.constant 0 : index
      %14 = vector.load %arg12[%c0_10, %c0_11] : memref<128x32xf32, #tpu.memory_space<vmem>>, vector<128x32xf32>
      tpu.vector_store %arg12[%c0_10, %c0_11], %13 {strides = array<i32>} : memref<128x32xf32, #tpu.memory_space<vmem>>, vector<128x32xf32>,
    } else {
    }
    %c0 = arith.constant 0 : index
    %c0_1 = arith.constant 0 : index
    %3 = vector.load %arg12[%c0, %c0_1] : memref<128x32xf32, #tpu.memory_space<vmem>>, vector<128x32xf32>
    %c0_2 = arith.constant 0 : index
    %c0_3 = arith.constant 0 : index
    %4 = vector.load %arg2[%c0_2, %c0_3] : memref<128x256xbf16, #tpu.memory_space<vmem>>, vector<128x256xbf16>
    %5 = arith.extf %4 : vector<128x256xbf16> to vector<128x256xf32>
    %c0_4 = arith.constant 0 : index
    %c0_5 = arith.constant 0 : index
    %6 = vector.load %arg4[%c0_4, %c0_5] : memref<256x32xf32, #tpu.memory_space<vmem>>, vector<256x32xf32>
    %cst = arith.constant dense<0.000000e+00> : vector<128x32xf32>
    %7 = tpu.matmul %5, %6, %cst {dimension_numbers = #tpu.dot_dimension_numbers<[1], [0], [0], [1], [0, 0, 1, 1], [], []>} : vector<128x256xf32>, vector<256x32xf32>, vector<128x32xf32> -> vector<128x32xf32>
    %8 = arith.addf %3, %7 : vector<128x32xf32>
    %c0_6 = arith.constant 0 : index
    %c0_7 = arith.constant 0 : index
    %9 = vector.load %arg12[%c0_6, %c0_7] : memref<128x32xf32, #tpu.memory_space<vmem>>, vector<128x32xf32>
    tpu.vector_store %arg12[%c0_6, %c0_7], %8 {strides = array<i32>} : memref<128x32xf32, #tpu.memory_space<vmem>>, vector<128x32xf32>,
    %c1_i32 = arith.constant 1 : i32
    %10 = arith.cmpi eq, %arg1, %c1_i32 : i32
    %11 = arith.extui %10 : i1 to i32
    %c0_i32_8 = arith.constant 0 : i32
    %12 = arith.cmpi ne, %11, %c0_i32_8 : i32
    scf.if %12 {
      %c0_9 = arith.constant 0 : index
      %c0_10 = arith.constant 0 : index
      %13 = vector.load %arg12[%c0_9, %c0_10] : memref<128x32xf32, #tpu.memory_space<vmem>>, vector<128x32xf32>
      %c0_11 = arith.constant 0 : index
      %c0_12 = arith.constant 0 : index
      %14 = vector.load %arg3[%c0_11, %c0_12] : memref<128x16xf32, #tpu.memory_space<vmem>>, vector<128x16xf32>
      %c0_13 = arith.constant 0 : index
      %c0_14 = arith.constant 0 : index
      %15 = vector.load %arg5[%c0_13, %c0_14] : memref<16x32xf32, #tpu.memory_space<vmem>>, vector<16x32xf32>
      %cst_15 = arith.constant dense<0.000000e+00> : vector<128x32xf32>
      %16 = tpu.matmul %14, %15, %cst_15 {dimension_numbers = #tpu.dot_dimension_numbers<[1], [0], [0], [1], [0, 0, 1, 1], [], []>} : vector<128x16xf32>, vector<16x32xf32>, vector<128x32xf32> -> vector<128x32xf32>
      %17 = arith.addf %13, %16 : vector<128x32xf32>
      %c0_16 = arith.constant 0 : index
      %c0_17 = arith.constant 0 : index
      %18 = vector.load %arg6[%c0_16, %c0_17] : memref<1x32xf32, #tpu.memory_space<vmem>>, vector<1x32xf32>
      %19 = vector.broadcast %18 : vector<1x32xf32> to vector<128x32xf32>
      %20 = arith.addf %17, %19 : vector<128x32xf32>
      %cst_18 = arith.constant 0.000000e+00 : f32
      %21 = vector.broadcast %cst_18 : f32 to vector<128x32xf32>
      %22 = arith.maximumf %20, %21 : vector<128x32xf32>
      %c0_19 = arith.constant 0 : index
      %c0_20 = arith.constant 0 : index
      %23 = vector.load %arg7[%c0_19, %c0_20] : memref<32x32xf32, #tpu.memory_space<vmem>>, vector<32x32xf32>
      %cst_21 = arith.constant dense<0.000000e+00> : vector<128x32xf32>
      %24 = tpu.matmul %22, %23, %cst_21 {dimension_numbers = #tpu.dot_dimension_numbers<[1], [0], [0], [1], [0, 0, 1, 1], [], []>} : vector<128x32xf32>, vector<32x32xf32>, vector<128x32xf32> -> vector<128x32xf32>
      %c0_22 = arith.constant 0 : index
      %c0_23 = arith.constant 0 : index
      %25 = vector.load %arg8[%c0_22, %c0_23] : memref<1x32xf32, #tpu.memory_space<vmem>>, vector<1x32xf32>
      %26 = vector.broadcast %25 : vector<1x32xf32> to vector<128x32xf32>
      %27 = arith.addf %24, %26 : vector<128x32xf32>
      %cst_24 = arith.constant 0.000000e+00 : f32
      %28 = vector.broadcast %cst_24 : f32 to vector<128x32xf32>
      %29 = arith.maximumf %27, %28 : vector<128x32xf32>
      %c0_25 = arith.constant 0 : index
      %c0_26 = arith.constant 0 : index
      %30 = vector.load %arg9[%c0_25, %c0_26] : memref<32x128xf32, #tpu.memory_space<vmem>>, vector<32x128xf32>
      %cst_27 = arith.constant dense<0.000000e+00> : vector<128x128xf32>
      %31 = tpu.matmul %29, %30, %cst_27 {dimension_numbers = #tpu.dot_dimension_numbers<[1], [0], [0], [1], [0, 0, 1, 1], [], []>} : vector<128x32xf32>, vector<32x128xf32>, vector<128x128xf32> -> vector<128x128xf32>
      %c0_28 = arith.constant 0 : index
      %c0_29 = arith.constant 0 : index
      %32 = vector.load %arg10[%c0_28, %c0_29] : memref<1x128xf32, #tpu.memory_space<vmem>>, vector<1x128xf32>
      %33 = vector.broadcast %32 : vector<1x128xf32> to vector<128x128xf32>
      %34 = arith.addf %31, %33 : vector<128x128xf32>
      %c0_30 = arith.constant 0 : index
      %c0_31 = arith.constant 0 : index
      %35 = vector.load %arg11[%c0_30, %c0_31] : memref<128x128xf32, #tpu.memory_space<vmem>>, vector<128x128xf32>
      tpu.vector_store %arg11[%c0_30, %c0_31], %34 {strides = array<i32>} : memref<128x128xf32, #tpu.memory_space<vmem>>, vector<128x128xf32>,
    } else {
    }
    return
  }
  func.func @transform_0(%arg0: i32, %arg1: i32) -> (i32, i32) {
    %c0_i32 = arith.constant 0 : i32
    return %arg0, %arg1 : i32, i32
  }
  func.func @transform_1(%arg0: i32, %arg1: i32) -> (i32, i32) {
    %c0_i32 = arith.constant 0 : i32
    %c0_i32_0 = arith.constant 0 : i32
    return %arg0, %c0_i32 : i32, i32
  }
  func.func @transform_2(%arg0: i32, %arg1: i32) -> (i32, i32) {
    %c0_i32 = arith.constant 0 : i32
    %c0_i32_0 = arith.constant 0 : i32
    return %arg1, %c0_i32 : i32, i32
  }
  func.func @transform_3(%arg0: i32, %arg1: i32) -> (i32, i32) {
    %c0_i32 = arith.constant 0 : i32
    %c0_i32_0 = arith.constant 0 : i32
    %c0_i32_1 = arith.constant 0 : i32
    return %c0_i32, %c0_i32_0 : i32, i32
  }
  func.func @transform_4(%arg0: i32, %arg1: i32) -> (i32, i32) {
    %c0_i32 = arith.constant 0 : i32
    %c0_i32_0 = arith.constant 0 : i32
    %c0_i32_1 = arith.constant 0 : i32
    return %c0_i32, %c0_i32_0 : i32, i32
  }
  func.func @transform_5(%arg0: i32, %arg1: i32) -> (i32, i32) {
    %c0_i32 = arith.constant 0 : i32
    %c0_i32_0 = arith.constant 0 : i32
    %c0_i32_1 = arith.constant 0 : i32
    return %c0_i32, %c0_i32_0 : i32, i32
  }
  func.func @transform_6(%arg0: i32, %arg1: i32) -> (i32, i32) {
    %c0_i32 = arith.constant 0 : i32
    %c0_i32_0 = arith.constant 0 : i32
    %c0_i32_1 = arith.constant 0 : i32
    return %c0_i32, %c0_i32_0 : i32, i32
  }
  func.func @transform_7(%arg0: i32, %arg1: i32) -> (i32, i32) {
    %c0_i32 = arith.constant 0 : i32
    %c0_i32_0 = arith.constant 0 : i32
    %c0_i32_1 = arith.constant 0 : i32
    return %c0_i32, %c0_i32_0 : i32, i32
  }
  func.func @transform_8(%arg0: i32, %arg1: i32) -> (i32, i32) {
    %c0_i32 = arith.constant 0 : i32
    %c0_i32_0 = arith.constant 0 : i32
    %c0_i32_1 = arith.constant 0 : i32
    return %c0_i32, %c0_i32_0 : i32, i32
  }
  func.func @transform_9(%arg0: i32, %arg1: i32) -> (i32, i32) {
    %c0_i32 = arith.constant 0 : i32
    %c0_i32_0 = arith.constant 0 : i32
    return %arg0, %c0_i32 : i32, i32
  }
}

</mosaic_0001>

<bundles_post_ra>
// kernel: tpu_custom_call.1
= control target key start
LH: loop header
LB: loop body
LE: loop exit
PB: predicated region body
PF: predicated region fallthrough
CT: control target
= control target key end

     0   :  { %s2800_s0 = inlined_call_operand.vmem [shape: bf16[512,512], index: 0, kind: input, shape index: {}]   ;;  %s2801_s1 = inlined_call_operand.vmem [shape: f32[512,16], index: 1, kind: input, shape index: {}]   ;;  %s2802_s2 = inlined_call_operand.vmem [shape: f32[512,32], index: 2, kind: input, shape index: {}]   ;;  %s2803_s3 = inlined_call_operand.hbm [shape: f32[16,32], index: 3, kind: input, shape index: {}]   ;;  %s2804_s4 = inlined_call_operand.vmem [shape: f32[1,32], index: 4, kind: input, shape index: {}]   ;;  %s2805_s5 = inlined_call_operand.vmem [shape: f32[32,32], index: 5, kind: input, shape index: {}]   ;;  %s2806_s6 = inlined_call_operand.vmem [shape: f32[1,32], index: 6, kind: input, shape index: {}]   ;;  %s2807_s7 = inlined_call_operand.vmem [shape: f32[32,128], index: 7, kind: input, shape index: {}]   ;;  %s2808_s8 = inlined_call_operand.vmem [shape: f32[1,128], index: 8, kind: input, shape index: {}]   ;;  %s2809_s9 = inlined_call_operand.hbm [shape: f32[512,128], index: 9, kind: output, shape index: {}]  }
   0x1   :  { %2822 = sst [smem:[#allocation18_spill]] %s2806_s6 }
   0x2   :  { %2823 = sst [smem:[#allocation19_spill]] %s2808_s8 }
   0x3   :  { %2824 = sst [smem:[#allocation20_spill]] %s2809_s9 }
   0x4   :  { %14 = vsyncpa [#allocation5], 0 }
   0x5   :  { %15 = vsyncpa [#allocation6], 0 }
   0x6   :  { %17 = vsyncpa [#allocation6 + $0x1], 0  ;;  %s2341_s30 = smov 0   ;;  %s2343_s10 = smov 0  }
   0x7   :  { %s2345_s11 = smov 0   ;;  %s2347_s12 = smov 0  }
   0x8   :  { %s2349_s13 = smov 0   ;;  %s2351_s14 = smov 0  }
   0x9   :  { %s2353_s15 = smov 0   ;;  %s2355_s16 = smov 0  }
   0xa   :  { %s2357_s17 = smov 0   ;;  %s2359_s18 = smov 0  }
   0xb LB: > { %2825 = sst [smem:[#allocation10_spill]] %s2246_s30  ;;  %s1659_s19 = sadd.s32 4294967295, %s2282_s18   ;;  %s2282_s18 = sphi %s2359_s18, %s23_s18   ;;  %s2278_s17 = sphi %s2357_s17, %s2862_s17   ;;  %s2274_s16 = sphi %s2355_s16, %s2861_s16   ;;  %s2270_s15 = sphi %s2353_s15, %s2860_s15   ;;  %s2266_s14 = sphi %s2351_s14, %s2859_s14   ;;  %s2262_s13 = sphi %s2349_s13, %s2858_s13   ;;  %s2258_s12 = sphi %s2347_s12, %s2857_s12   ;;  %s2254_s11 = sphi %s2345_s11, %s2851_s11   ;;  %s2250_s10 = sphi %s2343_s10, %s2856_s10   ;;  %s2246_s30 = sphi %s2341_s30, %s2855_s30  }
   0xc   : > { %2826 = sst [smem:[#allocation11_spill]] %s2254_s11  ;;  %s1660_s20 = sadd.s32 4294967294, %s2282_s18  }
   0xd   : > { %s32_s21 = sadd.s32 1, %s2274_s16  ;;  %s35_s22 = sadd.s32 1, %s2278_s17 }
   0xe   : > { %p33_p0 = scmp.ge.s32.totalorder %s32_s21, 2  ;;  %s44_s23 = sadd.s32 1, %s2262_s13 }
   0xf   : > { %p51_p1 = scmp.ne.s32.totalorder %s2262_s13, %s2258_s12  ;;  %p52_p2 = scmp.eq.s32.totalorder %s2282_s18, 0 }
  0x10   : > { %s2864_s21 = smov (%p33_p0, %s32_s21), 0  ;;  %s2866_s22 = smov (!%p33_p0, %s35_s22), %s2278_s17 }
  0x11   : > { %2827 = sst [smem:[#allocation12_spill]] %s2864_s21  ;;  %s40_s24 = ssub.s32 %s2274_s16, %s2864_s21 }
  0x12   : > { %p2404_p3 = por %p52_p2, %p51_p1  ;;  %p37_p4 = scmp.ge.s32.totalorder %s2866_s22, 4 }
  0x13   : > { %s248_s26 = sadd.s32 1, %s2254_s11  ;;  %p258_p5 = scmp.ne.s32.totalorder %s2254_s11, %s2250_s10 }
  0x14   : > { %s2828_s25 = scalar_select %p2404_p3, 1, 0 }
  0x15   : > { %p259_p6 = scmp.eq.s32.totalorder %s1659_s19, 7  ;;  %s2868_s22 = smov (%p37_p4, %s2866_s22), 0 }
  0x16   : > { %2829 = sst [smem:[#allocation13_spill]] %s2868_s22  ;;  %p264_p8 = scmp.ne.s32.totalorder %s2250_s10, %s2246_s30 }
  0x17   : > { %p2413_p7 = por %p259_p6, %p258_p5  ;;  %s39_s28 = ssub.s32 %s2278_s17, %s2868_s22 }
  0x18   : > { %p265_p9 = scmp.eq.s32.totalorder %s1660_s20, 7  ;;  %s41_s29 = sor.u32 %s40_s24, %s39_s28 }
  0x19   : > { %s2830_s27 = scalar_select %p2413_p7, 1, 0 }
  0x1a   : > { %p246_p10 = scmp.eq.s32.totalorder %s39_s28, 0  ;;  %p42_p11 = scmp.eq.s32.totalorder %s41_s29, 0 }
  0x1b   : > { %2831 = sst [smem:[#allocation14_spill]] %s2830_s27  ;;  %p2421_p12 = por %p265_p9, %p264_p8 }
  0x1c   : > { %s2426_s9 = scalar_select %p246_p10, %s2254_s11, %s248_s26  }
  0x1d   : > { %s2832_s21 = scalar_select %p2421_p12, 1, 0 }
  0x1e   : > { %2834 = sst [smem:[#allocation16_spill]] %s2426_s9  ;;  %p1661_p13 = scmp.ge.s32.totalorder %s2282_s18, 1 }
  0x1f   : > { %2833 = sst [smem:[#allocation15_spill]] %s2832_s21  ;;  %p272_p0 = scmp.lt.s32.totalorder %s2282_s18, 9 }
  0x20   : > { %s2429_s8 = scalar_select %p42_p11, %s2262_s13, %s44_s23  }
  0x21   : > { %p2433_p1 = scmp.eq.s32.totalorder %s1659_s19, 0  ;;  %p2437_p2 = pnand %p1661_p13, %p272_p0 }
  0x22   : > { %2835 = sst [smem:[#allocation17_spill]] %s2429_s8  ;;  %s2284_s24 = smov [#allocation4]  }
  0x23   : > { %s2836_s6 = scalar_select %p2433_p1, 1, 0 }
  0x24   : > { %s2837_s20 = scalar_select %p2437_p2, 1, 0 }
  0x25   : > { %s284_s28 = sshll.u32 %s2284_s24, 4  ;;  %p2043_p4 = pneg %p2437_p2  ;;  %s285_s28 = int_to_ptr.vmem [resolvable:$true] %s284_s28 }
  0x26   : > { %s2140_s29 = scalar_lea.hbm %s2803_s3, 256 }
  0x27   : > { %p2445_p5 = pnand %p2433_p1, %p2043_p4  ;;  %p2141_p6 = scmp.ne.s32.totalorder %s2803_s3, %s2140_s29 }
  0x28   : > { %p2147_p11 = scmp.lt.u32.totalorder %s2140_s29, %s2803_s3 }
  0x29   : > { %p2142_p8 = pneg %p2445_p5 }
  0x2b   : > { %p2143_p9 = pnand %p2142_p8, %p2141_p6 }
  0x2d   : > { %p2144_p10 = pneg %p2143_p9 }
  0x2f   : > { %p2149_p13 = pnand %p2147_p11, %p2144_p10 }
  0x31   : > { %2152 = shalt.err (!%p2149_p13)
}
  0x32   : > { %s2153_s11 = scalar_lea.vmem %s285_s28, 256  ;;  %p2161_p7 = scmp.lt.s32.totalorder %s285_s28, %s285_s28 }
  0x33   : > { %p2154_p0 = scmp.ne.s32.totalorder %s285_s28, %s2153_s11  ;;  %p2162_p1 = scmp.lt.s32.totalorder %s2153_s11, %s2153_s11 }
  0x35   : > { %p2156_p4 = pnand %p2154_p0, %p2142_p8  ;;  %p2163_p2 = por %p2162_p1, %p2161_p7 }
  0x37   : > { %p2157_p12 = pneg %p2156_p4 }
  0x39   : > { %p2164_p3 = pnand %p2163_p2, %p2157_p12 }
  0x3b   : > { %2167 = shalt.err (!%p2164_p3)
}
  0x3c   : > { %s2285_s8 = smov 128   ;;  %s2286_s22 = smov 8  }
  0x3d   : > { %2046 = dma.hbm_to_vmem [thread:$0]  (!%p2445_p5), %s2803_s3, 256, %s285_s28, [#allocation5], %s2285_s8, %s2285_s8, %s2286_s22  }
  0x3e   : > { %p1663_p6 = scmp.ge.s32.totalorder %s2282_s18, 8 }
  0x3f   : > { %p2839_p9 = scmp.ne.s32.totalorder (!%p1663_p6), %s2828_s25, 0 }
  0x40   : > { %309 = sbr.rel (%p1663_p6) target bundleno = 86 (0x56), region = 40 }
  0x47   : > { %312 = sbr.rel (!%p2839_p9) target bundleno = 86 (0x56), region = 44  ;;  %s314_s9 = sand.u32 (%p2839_p9), 1, %s2262_s13  }
  0x48   : > { %s1666_s11 = sshll.u32 (%p2839_p9), %s2274_s16, 1  ;;  %s1664_s29 = sshll.u32 (%p2839_p9), %s314_s9, 7 }
  0x49   : > { %s1735_s24 = sshll.u32 (%p2839_p9), %s2278_s17, 6  ;;  %s316_s25 = scalar_lea.vmem (%p2839_p9), [#allocation3], %s1664_s29 }
  0x4a   : > { %s320_s21 = sadd.s32 (%p2839_p9), %s1735_s24, %s1666_s11 }
  0x4b   : > { %s1668_s30 = sshll.u32 (%p2839_p9), %s320_s21, 2 }
  0x4c   : > { %s2474_s19 = scalar_lea.vmem (%p2839_p9), %s2800_s0, %s1668_s30 }
  0x4d   : > { %v380_v0 = vld [vmem:[%s2474_s19] sm:$0xff] (%p2839_p9)  ;;  %v382_v1 = vld [vmem:[%s2474_s19 + $0x10] sm:$0xff] (%p2839_p9) }
  0x4e   : > { %v384_v2 = vld [vmem:[%s2474_s19 + $0x20] sm:$0xff]  ;;  %381 = vst [vmem:[%s316_s25] sm:$0xff] %v380_v0  ;;  %383 = vst [vmem:[%s316_s25 + $0x8] sm:$0xff] %v382_v1  ;;  %v386_v3 = vld [vmem:[%s2474_s19 + $0x30] sm:$0xff] }
  0x4f   : > { %385 = vst [vmem:[%s316_s25 + $0x10] sm:$0xff] %v384_v2  ;;  %v388_v4 = vld [vmem:[%s2474_s19 + $0x40] sm:$0xff]  ;;  %v390_v5 = vld [vmem:[%s2474_s19 + $0x50] sm:$0xff]  ;;  %387 = vst [vmem:[%s316_s25 + $0x18] sm:$0xff] %v386_v3 }
  0x50   : > { %389 = vst [vmem:[%s316_s25 + $0x20] sm:$0xff] %v388_v4  ;;  %391 = vst [vmem:[%s316_s25 + $0x28] sm:$0xff] %v390_v5  ;;  %v392_v6 = vld [vmem:[%s2474_s19 + $0x60] sm:$0xff]  ;;  %v394_v7 = vld [vmem:[%s2474_s19 + $0x70] sm:$0xff] }
  0x51   : > { %v396_v8 = vld [vmem:[%s2474_s19 + $0x80] sm:$0xff]  ;;  %393 = vst [vmem:[%s316_s25 + $0x30] sm:$0xff] %v392_v6  ;;  %395 = vst [vmem:[%s316_s25 + $0x38] sm:$0xff] %v394_v7  ;;  %v398_v9 = vld [vmem:[%s2474_s19 + $0x90] sm:$0xff] }
  0x52   : > { %397 = vst [vmem:[%s316_s25 + $0x40] sm:$0xff] %v396_v8  ;;  %v400_v10 = vld [vmem:[%s2474_s19 + $0xa0] sm:$0xff]  ;;  %v402_v11 = vld [vmem:[%s2474_s19 + $0xb0] sm:$0xff]  ;;  %399 = vst [vmem:[%s316_s25 + $0x48] sm:$0xff] %v398_v9 }
  0x53   : > { %401 = vst [vmem:[%s316_s25 + $0x50] sm:$0xff] %v400_v10  ;;  %403 = vst [vmem:[%s316_s25 + $0x58] sm:$0xff] %v402_v11  ;;  %v404_v12 = vld [vmem:[%s2474_s19 + $0xc0] sm:$0xff]  ;;  %v406_v13 = vld [vmem:[%s2474_s19 + $0xd0] sm:$0xff] }
  0x54   : > { %v408_v14 = vld [vmem:[%s2474_s19 + $0xe0] sm:$0xff]  ;;  %405 = vst [vmem:[%s316_s25 + $0x60] sm:$0xff] %v404_v12  ;;  %407 = vst [vmem:[%s316_s25 + $0x68] sm:$0xff] %v406_v13  ;;  %v410_v15 = vld [vmem:[%s2474_s19 + $0xf0] sm:$0xff] }
  0x55   : > { %409 = vst [vmem:[%s316_s25 + $0x70] sm:$0xff] %v408_v14  ;;  %411 = vst [vmem:[%s316_s25 + $0x78] sm:$0xff] %v410_v15 }
  0x56 PF: > { %p2840_p3 = scmp.ne.s32.totalorder %s2837_s20, 0 }
  0x57   : > { %s441_s30 = sand.u32 (!%p2840_p3), 1, %s2258_s12   ;;  %p2841_p7 = scmp.ne.s32.totalorder (!%p2840_p3), %s2836_s6, 0 }
  0x58   : > { %438 = sbr.rel (%p2840_p3) target bundleno = 1082 (0x43a), region = 90  ;;  %s1670_s21 = sshll.u32 (!%p2840_p3), %s441_s30, 7 }
  0x59   : > { %s2495_s27 = scalar_lea.vmem (!%p2840_p3), [#allocation3], %s1670_s21 }
  0x5f   : > { %2237 = dma.done.wait (%p2841_p7), [#allocation5], 256  }
  0x60   : > { %2239 = vsyncadd (%p2841_p7), [#allocation5], 4294967040  ;;  %s487_s28 = sand.u32 1, %s2250_s10   ;;  %s1673_s8 = sshll.u32 %s2270_s15, 4 }
  0x61   : > { %s1672_s20 = sshll.u32 %s487_s28, 7  ;;  %p493_p12 = scmp.lt.s32.totalorder %s1673_s8, 63 }
  0x62   : > { %s1675_s22 = sshll.u32 %s2266_s14, 5  ;;  %s2516_s19 = scalar_lea.vmem [#allocation7], %s1672_s20 }
  0x63   : > { %s2870_s8 = smov (!%p493_p12, %s1673_s8), 63  ;;  %p499_p1 = scmp.lt.s32.totalorder %s1675_s22, 63 }
  0x64   : > { %s1674_s12 = sshll.u32 %s2870_s8, 3  ;;  %p1677_p2 = scmp.ne.s32.totalorder %s2266_s14, 0 }
  0x65   : > { %s2509_s11 = scalar_lea.vmem %s2801_s1, %s1674_s12  ;;  %s2872_s22 = smov (!%p499_p1, %s1675_s22), 63  ;;  %vm509_vm0 = vcmask (!%p1677_p2), 261120   ;;  %v2287_v16 = vmov (!%p1677_p2), 0.0  }
  0x66   : > { %s1676_s6 = sshll.u32 %s2872_s22, 3  ;;  %508 = sbr.rel (%p1677_p2) target bundleno = 110 (0x6e), region = 102  ;;  %510 = vst.msk [vmem:[#allocation2] sm:$0xff] (!%p1677_p2), %vm509_vm0, %v2287_v16  ;;  %511 = vst.msk [vmem:[#allocation2 + $0x8] sm:$0xff] (!%p1677_p2), %vm509_vm0, %v2287_v16 }
  0x67   : > { %s2514_s23 = scalar_lea.vmem %s2802_s2, %s1676_s6  ;;  %512 = vst.msk [vmem:[#allocation2 + $0x10] sm:$0xff] (!%p1677_p2), %vm509_vm0, %v2287_v16  ;;  %513 = vst.msk [vmem:[#allocation2 + $0x18] sm:$0xff] (!%p1677_p2), %vm509_vm0, %v2287_v16 }
  0x68   : > { %514 = vst.msk [vmem:[#allocation2 + $0x20] sm:$0xff] (!%p1677_p2), %vm509_vm0, %v2287_v16  ;;  %515 = vst.msk [vmem:[#allocation2 + $0x28] sm:$0xff] (!%p1677_p2), %vm509_vm0, %v2287_v16 }
  0x69   : > { %516 = vst.msk [vmem:[#allocation2 + $0x30] sm:$0xff] (!%p1677_p2), %vm509_vm0, %v2287_v16  ;;  %517 = vst.msk [vmem:[#allocation2 + $0x38] sm:$0xff] (!%p1677_p2), %vm509_vm0, %v2287_v16 }
  0x6a   : > { %518 = vst.msk [vmem:[#allocation2 + $0x40] sm:$0xff] (!%p1677_p2), %vm509_vm0, %v2287_v16  ;;  %519 = vst.msk [vmem:[#allocation2 + $0x48] sm:$0xff] (!%p1677_p2), %vm509_vm0, %v2287_v16 }
  0x6b   : > { %520 = vst.msk [vmem:[#allocation2 + $0x50] sm:$0xff] (!%p1677_p2), %vm509_vm0, %v2287_v16  ;;  %521 = vst.msk [vmem:[#allocation2 + $0x58] sm:$0xff] (!%p1677_p2), %vm509_vm0, %v2287_v16 }
  0x6c   : > { %522 = vst.msk [vmem:[#allocation2 + $0x60] sm:$0xff] (!%p1677_p2), %vm509_vm0, %v2287_v16  ;;  %523 = vst.msk [vmem:[#allocation2 + $0x68] sm:$0xff] (!%p1677_p2), %vm509_vm0, %v2287_v16 }
  0x6d   : > { %524 = vst.msk [vmem:[#allocation2 + $0x70] sm:$0xff] %vm509_vm0, %v2287_v16  ;;  %525 = vst.msk [vmem:[#allocation2 + $0x78] sm:$0xff] %vm509_vm0, %v2287_v16 }
  0x6e PF: > { %v606_v17 = vld [vmem:[%s2514_s23 + $0x80] sm:$0xff]  ;;  %v607_v18 = vld [vmem:[%s2514_s23 + $0x88] sm:$0xff]  ;;  %v608_v22 = vld [vmem:[%s2514_s23 + $0x90] sm:$0xff]  ;;  %vm783_vm1 = vcmask 261120   ;;  %p1678_p5 = scmp.ne.s32.totalorder %s2266_s14, 1 }
  0x6f   : > { %v590_v19 = vld [vmem:[%s2514_s23] sm:$0xff]  ;;  %v1967_v20 = vpack.c.bf16 %v607_v18, %v606_v17  ;;  %v591_v21 = vld [vmem:[%s2514_s23 + $0x8] sm:$0xff]  ;;  %v609_v23 = vld [vmem:[%s2514_s23 + $0x98] sm:$0xff]  ;;  %vm838_vm2 = vcmask (!%p1678_p5), 130048   ;;  %s2843_s22 = sld [smem:[#allocation19_spill]] (!%p1678_p5) }
  0x70   : > { %v1969_v24 = vpack.c.bf16 %v591_v21, %v590_v19  ;;  %v1971_v25 = vpack.c.bf16 %v609_v23, %v608_v22  ;;  %v592_v26 = vld [vmem:[%s2514_s23 + $0x10] sm:$0xff]  ;;  %v593_v27 = vld [vmem:[%s2514_s23 + $0x18] sm:$0xff]  ;;  %v610_v28 = vld [vmem:[%s2514_s23 + $0xa0] sm:$0xff] }
  0x71   : > { %1968 = vmatprep.subr.bf16.mxu0 %v1967_v20  ;;  %2019 = vmatprep.subr.bf16.mxu1 %v1967_v20  ;;  %v611_v29 = vld [vmem:[%s2514_s23 + $0xa8] sm:$0xff]  ;;  %v1973_v30 = vpack.c.bf16 %v593_v27, %v592_v26  ;;  %v594_v32 = vld [vmem:[%s2514_s23 + $0x20] sm:$0xff]  ;;  %v612_v34 = vld [vmem:[%s2514_s23 + $0xb0] sm:$0xff] }
  0x72   : > { %1970 = vmatpush3.bf16.msra.mxu0 %v1969_v24  ;;  %2027 = vmatpush3.bf16.msra.mxu1 %v1969_v24  ;;  %v1975_v31 = vpack.c.bf16 %v611_v29, %v610_v28  ;;  %v595_v33 = vld [vmem:[%s2514_s23 + $0x28] sm:$0xff]  ;;  %v613_v35 = vld [vmem:[%s2514_s23 + $0xb8] sm:$0xff]  ;;  %v596_v38 = vld [vmem:[%s2514_s23 + $0x30] sm:$0xff] }
  0x73   : > { %1972 = vmatprep.subr.bf16.mxu0 %v1971_v25  ;;  %2020 = vmatprep.subr.bf16.mxu1 %v1971_v25  ;;  %v1977_v36 = vpack.c.bf16 %v595_v33, %v594_v32  ;;  %v1979_v37 = vpack.c.bf16 %v613_v35, %v612_v34  ;;  %v597_v39 = vld [vmem:[%s2514_s23 + $0x38] sm:$0xff]  ;;  %v614_v40 = vld [vmem:[%s2514_s23 + $0xc0] sm:$0xff]  ;;  %v615_v41 = vld [vmem:[%s2514_s23 + $0xc8] sm:$0xff] }
  0x74   : > { %v542_v42 = vld [vmem:[%s2495_s27] sm:$0xff]  ;;  %v1981_v45 = vpack.c.bf16 %v597_v39, %v596_v38  ;;  %v1983_v47 = vpack.c.bf16 %v615_v41, %v614_v40  ;;  %v599_v49 = vld [vmem:[%s2514_s23 + $0x48] sm:$0xff]  ;;  %v616_v50 = vld [vmem:[%s2514_s23 + $0xd0] sm:$0xff] }
  0x75   : > { %v559_v43 = vunpack.c.h.bf16 %v542_v42  ;;  %v550_v44 = vld [vmem:[%s2495_s27 + $0x40] sm:$0xff]  ;;  %v617_v51 = vld [vmem:[%s2514_s23 + $0xd8] sm:$0xff]  ;;  %v600_v54 = vld [vmem:[%s2514_s23 + $0x50] sm:$0xff]  ;;  %v558_v7 = vunpack.c.l.bf16 %v542_v42 }
  0x76   : > { %1974 = vmatpush3.bf16.msra.mxu0 %v1973_v30  ;;  %2028 = vmatpush3.bf16.msra.mxu1 %v1973_v30  ;;  %v575_v46 = vunpack.c.h.bf16 %v550_v44  ;;  %v598_v48 = vld [vmem:[%s2514_s23 + $0x40] sm:$0xff]  ;;  %v1987_v53 = vpack.c.bf16 %v617_v51, %v616_v50  ;;  %v601_v55 = vld [vmem:[%s2514_s23 + $0x58] sm:$0xff]  ;;  %v619_v57 = vld [vmem:[%s2514_s23 + $0xe8] sm:$0xff]  ;;  %v574_v8 = vunpack.c.l.bf16 %v550_v44 }
  0x77   : > { %1976 = vmatprep.subr.bf16.mxu0 %v1975_v31  ;;  %2021 = vmatprep.subr.bf16.mxu1 %v1975_v31  ;;  %v1985_v52 = vpack.c.bf16 %v599_v49, %v598_v48  ;;  %v618_v56 = vld [vmem:[%s2514_s23 + $0xe0] sm:$0xff]  ;;  %v1989_v58 = vpack.c.bf16 %v601_v55, %v600_v54  ;;  %v603_v61 = vld [vmem:[%s2514_s23 + $0x68] sm:$0xff]  ;;  %v620_v62 = vld [vmem:[%s2514_s23 + $0xf0] sm:$0xff] }
  0x78   : > { %686 = vmatprep.mubr.f32.mxu0 %v559_v43  ;;  %726 = vmatprep.mubr.f32.mxu1 %v575_v46  ;;  %v1991_v59 = vpack.c.bf16 %v619_v57, %v618_v56  ;;  %v602_v60 = vld [vmem:[%s2514_s23 + $0x60] sm:$0xff]  ;;  %v621_v63 = vld [vmem:[%s2514_s23 + $0xf8] sm:$0xff]  ;;  %v604_v2 = vld [vmem:[%s2514_s23 + $0x70] sm:$0xff] }
  0x79   : > { %v1993_v0 = vpack.c.bf16 %v603_v61, %v602_v60  ;;  %v1995_v1 = vpack.c.bf16 %v621_v63, %v620_v62  ;;  %v605_v3 = vld [vmem:[%s2514_s23 + $0x78] sm:$0xff]  ;;  %v543_v5 = vld [vmem:[%s2495_s27 + $0x8] sm:$0xff]  ;;  %v544_v11 = vld [vmem:[%s2495_s27 + $0x10] sm:$0xff] }
  0x7a   : > { %1978 = vmatpush3.bf16.msra.mxu0 %v1977_v36  ;;  %2029 = vmatpush3.bf16.msra.mxu1 %v1977_v36  ;;  %v1997_v4 = vpack.c.bf16 %v605_v3, %v604_v2  ;;  %v551_v6 = vld [vmem:[%s2495_s27 + $0x48] sm:$0xff]  ;;  %v561_v9 = vunpack.c.h.bf16 %v543_v5  ;;  %v552_v12 = vld [vmem:[%s2495_s27 + $0x50] sm:$0xff]  ;;  %v560_v13 = vunpack.c.l.bf16 %v543_v5  ;;  %v563_v15 = vunpack.c.h.bf16 %v544_v11  ;;  %v545_v17 = vld [vmem:[%s2495_s27 + $0x18] sm:$0xff] }
  0x7b   : > { %1980 = vmatprep.subr.bf16.mxu0 %v1979_v37  ;;  %2022 = vmatprep.subr.bf16.mxu1 %v1979_v37  ;;  %v577_v10 = vunpack.c.h.bf16 %v551_v6  ;;  %v576_v14 = vunpack.c.l.bf16 %v551_v6  ;;  %v579_v16 = vunpack.c.h.bf16 %v552_v12  ;;  %v553_v18 = vld [vmem:[%s2495_s27 + $0x58] sm:$0xff]  ;;  %v562_v19 = vunpack.c.l.bf16 %v544_v11  ;;  %v546_v23 = vld [vmem:[%s2495_s27 + $0x20] sm:$0xff]  ;;  %v547_v29 = vld [vmem:[%s2495_s27 + $0x28] sm:$0xff] }
  0x7c   : > { %v578_v20 = vunpack.c.l.bf16 %v552_v12  ;;  %v565_v21 = vunpack.c.h.bf16 %v545_v17  ;;  %v581_v22 = vunpack.c.h.bf16 %v553_v18  ;;  %v554_v24 = vld [vmem:[%s2495_s27 + $0x60] sm:$0xff]  ;;  %v564_v25 = vunpack.c.l.bf16 %v545_v17  ;;  %v555_v30 = vld [vmem:[%s2495_s27 + $0x68] sm:$0xff]  ;;  %v548_v35 = vld [vmem:[%s2495_s27 + $0x30] sm:$0xff] }
  0x7d   : > { %v580_v26 = vunpack.c.l.bf16 %v553_v18  ;;  %v567_v27 = vunpack.c.h.bf16 %v546_v23  ;;  %v583_v28 = vunpack.c.h.bf16 %v554_v24  ;;  %v566_v31 = vunpack.c.l.bf16 %v546_v23  ;;  %v556_v36 = vld [vmem:[%s2495_s27 + $0x70] sm:$0xff]  ;;  %v549_v41 = vld [vmem:[%s2495_s27 + $0x38] sm:$0xff]  ;;  %v526_v51 = vld [vmem:[#allocation2] sm:$0xff] }
  0x7e   : > { %1982 = vmatpush3.bf16.msra.mxu0 %v1981_v45  ;;  %2030 = vmatpush3.bf16.msra.mxu1 %v1981_v45  ;;  %v582_v32 = vunpack.c.l.bf16 %v554_v24  ;;  %v569_v33 = vunpack.c.h.bf16 %v547_v29  ;;  %v585_v34 = vunpack.c.h.bf16 %v555_v30  ;;  %v568_v37 = vunpack.c.l.bf16 %v547_v29  ;;  %v557_v42 = vld [vmem:[%s2495_s27 + $0x78] sm:$0xff]  ;;  %v527_v61 = vld [vmem:[#allocation2 + $0x8] sm:$0xff]  ;;  %v538_v29 = vld [vmem:[#allocation2 + $0x60] sm:$0xff]  ;;  %s2842_s27 = sld [smem:[#allocation18_spill]] (!%p1678_p5) }
  0x7f   : > { %1984 = vmatprep.subr.bf16.mxu0 %v1983_v47  ;;  %2023 = vmatprep.subr.bf16.mxu1 %v1983_v47  ;;  %v584_v38 = vunpack.c.l.bf16 %v555_v30  ;;  %v571_v39 = vunpack.c.h.bf16 %v548_v35  ;;  %v587_v40 = vunpack.c.h.bf16 %v556_v36  ;;  %v570_v43 = vunpack.c.l.bf16 %v548_v35  ;;  %v535_v63 = vld [vmem:[#allocation2 + $0x48] sm:$0xff]  ;;  %v529_v17 = vld [vmem:[#allocation2 + $0x18] sm:$0xff] }
  0x80   : > { %v586_v44 = vunpack.c.l.bf16 %v556_v36  ;;  %v573_v45 = vunpack.c.h.bf16 %v549_v41  ;;  %v589_v46 = vunpack.c.h.bf16 %v557_v42  ;;  %v572_v47 = vunpack.c.l.bf16 %v549_v41 }
  0x81   : > { %v588_v48 = vunpack.c.l.bf16 %v557_v42 }
  0x82   : > { %1986 = vmatpush3.bf16.msra.mxu0 %v1985_v52  ;;  %2031 = vmatpush3.bf16.msra.mxu1 %v1985_v52 }
  0x83   : > { %1988 = vmatprep.subr.bf16.mxu0 %v1987_v53  ;;  %2024 = vmatprep.subr.bf16.mxu1 %v1987_v53  ;;  %v534_v53 = vld [vmem:[#allocation2 + $0x40] sm:$0xff] }
  0x86   : > { %1990 = vmatpush3.bf16.msra.mxu0 %v1989_v58  ;;  %2032 = vmatpush3.bf16.msra.mxu1 %v1989_v58 }
  0x87   : > { %1992 = vmatprep.subr.bf16.mxu0 %v1991_v59  ;;  %2025 = vmatprep.subr.bf16.mxu1 %v1991_v59 }
  0x8a   : > { %1994 = vmatpush3.bf16.msra.mxu0 %v1993_v0  ;;  %2033 = vmatpush3.bf16.msra.mxu1 %v1993_v0 }
  0x8b   : > { %1996 = vmatprep.subr.bf16.mxu0 %v1995_v1  ;;  %2026 = vmatprep.subr.bf16.mxu1 %v1995_v1 }
  0x8e   : > { %1998 = vmatpush3.bf16.msra.mxu0 %v1997_v4  ;;  %2034 = vmatpush3.bf16.msra.mxu1 %v1997_v4 }
  0x91   : > { %687 = vmatmul.mubr.f32.vlgmr.msra.gmra.mrb[0].mxu0 %v558_v7  ;;  %727 = vmatmul.mubr.f32.vlgmr.msra.gmra.mrb[0].mxu1 %v574_v8  ;;  %v528_v7 = vld [vmem:[#allocation2 + $0x10] sm:$0xff] }
  0x92   : > { %691 = vmatprep.mubr.f32.mxu0 %v561_v9  ;;  %731 = vmatprep.mubr.f32.mxu1 %v577_v10  ;;  %v536_v9 = vld [vmem:[#allocation2 + $0x50] sm:$0xff] }
  0x95   : > { %692 = vmatmul.mubr.f32.gmra.mrb[2].mxu0 %v560_v13  ;;  %732 = vmatmul.mubr.f32.gmra.mrb[2].mxu1 %v576_v14 }
  0x96   : > { %696 = vmatprep.mubr.f32.mxu0 %v563_v15  ;;  %736 = vmatprep.mubr.f32.mxu1 %v579_v16 }
  0x99   : > { %697 = vmatmul.mubr.f32.gmra.mrb[4].mxu0 %v562_v19  ;;  %737 = vmatmul.mubr.f32.gmra.mrb[4].mxu1 %v578_v20  ;;  %v537_v19 = vld [vmem:[#allocation2 + $0x58] sm:$0xff] }
  0x9a   : > { %701 = vmatprep.mubr.f32.mxu0 %v565_v21  ;;  %741 = vmatprep.mubr.f32.mxu1 %v581_v22 }
  0x9d   : > { %702 = vmatmul.mubr.f32.gmra.mrb[6].mxu0 %v564_v25  ;;  %742 = vmatmul.mubr.f32.gmra.mrb[6].mxu1 %v580_v26 }
  0x9e   : > { %706 = vmatprep.mubr.f32.mxu0 %v567_v27  ;;  %746 = vmatprep.mubr.f32.mxu1 %v583_v28  ;;  %v530_v27 = vld [vmem:[#allocation2 + $0x20] sm:$0xff] }
  0xa1   : > { %707 = vmatmul.mubr.f32.gmra.mrb[8].mxu0 %v566_v31  ;;  %747 = vmatmul.mubr.f32.gmra.mrb[8].mxu1 %v582_v32 }
  0xa2   : > { %711 = vmatprep.mubr.f32.mxu0 %v569_v33  ;;  %751 = vmatprep.mubr.f32.mxu1 %v585_v34 }
  0xa5   : > { %712 = vmatmul.mubr.f32.gmra.mrb[10].mxu0 %v568_v37  ;;  %752 = vmatmul.mubr.f32.gmra.mrb[10].mxu1 %v584_v38  ;;  %v531_v37 = vld [vmem:[#allocation2 + $0x28] sm:$0xff] }
  0xa6   : > { %716 = vmatprep.mubr.f32.mxu0 %v571_v39  ;;  %756 = vmatprep.mubr.f32.mxu1 %v587_v40  ;;  %v539_v39 = vld [vmem:[#allocation2 + $0x68] sm:$0xff] }
  0xa9   : > { %717 = vmatmul.mubr.f32.gmra.mrb[12].mxu0 %v570_v43  ;;  %757 = vmatmul.mubr.f32.gmra.mrb[12].mxu1 %v586_v44 }
  0xaa   : > { %721 = vmatprep.mubr.f32.mxu0 %v573_v45  ;;  %761 = vmatprep.mubr.f32.mxu1 %v589_v46 }
  0xad   : > { %722 = vmatmul.mubr.f32.gmra.mrb[14].mxu0 %v572_v47  ;;  %762 = vmatmul.mubr.f32.gmra.mrb[14].mxu1 %v588_v48  ;;  %v532_v47 = vld [vmem:[#allocation2 + $0x30] sm:$0xff] }
 0x164   : > { %v1769_v49 = vpop.f32.mrb[0].mxu0  ;;  %v1793_v50 = vpop.f32.mrb[0].mxu1 }
 0x165   : > { %v1770_v52 = vpop.f32.mrb[1].mxu0  ;;  %v1794_v54 = vpop.f32.mrb[1].mxu1 }
 0x166   : > { %v1771_v55 = vadd.f32 %v1770_v52, %v1769_v49  ;;  %v1795_v56 = vadd.f32 %v1794_v54, %v1793_v50  ;;  %v540_v49 = vld [vmem:[#allocation2 + $0x70] sm:$0xff] }
 0x168   : > { %v767_v57 = vadd.f32 %v1771_v55, %v526_v51  ;;  %v775_v58 = vadd.f32 %v1795_v56, %v534_v53  ;;  %v1772_v59 = vpop.f32.mrb[2].mxu0  ;;  %v1796_v60 = vpop.f32.mrb[2].mxu1 }
 0x169   : > { %v1773_v62 = vpop.f32.mrb[3].mxu0  ;;  %v1797_v0 = vpop.f32.mrb[3].mxu1 }
 0x16a   : > { %784 = vst.msk [vmem:[#allocation2] sm:$0xff] %vm783_vm1, %v767_v57  ;;  %792 = vst.msk [vmem:[#allocation2 + $0x40] sm:$0xff] %vm783_vm1, %v775_v58  ;;  %v1774_v1 = vadd.f32 %v1773_v62, %v1772_v59  ;;  %v1798_v2 = vadd.f32 %v1797_v0, %v1796_v60  ;;  %v533_v57 = vld [vmem:[#allocation2 + $0x38] sm:$0xff] }
 0x16b   : > { %v541_v59 = vld [vmem:[#allocation2 + $0x78] sm:$0xff] }
 0x16c   : > { %v768_v3 = vadd.f32 %v1774_v1, %v527_v61  ;;  %v776_v4 = vadd.f32 %v1798_v2, %v535_v63  ;;  %v1775_v5 = vpop.f32.mrb[4].mxu0  ;;  %v1799_v6 = vpop.f32.mrb[4].mxu1  ;;  %v836_v1 = vld [vmem:[#allocation4] sm:$0xff] (!%p1678_p5)  ;;  %v837_v2 = vld [vmem:[#allocation4 + $0x8] sm:$0xff] (!%p1678_p5) }
 0x16d   : > { %v1776_v8 = vpop.f32.mrb[5].mxu0  ;;  %v1800_v10 = vpop.f32.mrb[5].mxu1 }
 0x16e   : > { %785 = vst.msk [vmem:[#allocation2 + $0x8] sm:$0xff] %vm783_vm1, %v768_v3  ;;  %793 = vst.msk [vmem:[#allocation2 + $0x48] sm:$0xff] %vm783_vm1, %v776_v4  ;;  %v1777_v11 = vadd.f32 %v1776_v8, %v1775_v5  ;;  %v1801_v12 = vadd.f32 %v1800_v10, %v1799_v6  ;;  %v820_v3 = vld [vmem:[%s2509_s11] sm:$0xff] (!%p1678_p5)  ;;  %v1999_v4 = vpack.c.bf16 (!%p1678_p5), %v837_v2, %v836_v1  ;;  %v821_v6 = vld [vmem:[%s2509_s11 + $0x8] sm:$0xff] (!%p1678_p5) }
 0x16f   : > { %1879 = vmatprep.mubr.msk.f32.mxu0 (!%p1678_p5), %vm838_vm2, %v820_v3  ;;  %v828_v5 = vld [vmem:[%s2509_s11 + $0x40] sm:$0xff] (!%p1678_p5)  ;;  %v822_v8 = vld [vmem:[%s2509_s11 + $0x10] sm:$0xff] (!%p1678_p5) }
 0x170   : > { %v769_v13 = vadd.f32 %v1777_v11, %v528_v7  ;;  %v777_v14 = vadd.f32 %v1801_v12, %v536_v9  ;;  %v1778_v15 = vpop.f32.mrb[6].mxu0  ;;  %v1802_v16 = vpop.f32.mrb[6].mxu1  ;;  %2000 = vmatprep.subr.bf16.mxu0 (!%p1678_p5), %v1999_v4  ;;  %2035 = vmatprep.subr.bf16.mxu1 (!%p1678_p5), %v1999_v4  ;;  %v829_v7 = vld [vmem:[%s2509_s11 + $0x48] sm:$0xff] (!%p1678_p5)  ;;  %v830_v9 = vld [vmem:[%s2509_s11 + $0x50] sm:$0xff] (!%p1678_p5)  ;;  %v1087_v10 = vld [vmem:[%s2805_s5] sm:$0xff] (!%p1678_p5) }
 0x171   : > { %v1779_v18 = vpop.f32.mrb[7].mxu0  ;;  %v1803_v20 = vpop.f32.mrb[7].mxu1  ;;  %2002 = vmatpush3.bf16.msra.mxu0 (!%p1678_p5), %v1999_v4  ;;  %2036 = vmatpush3.bf16.msra.mxu1 (!%p1678_p5), %v1999_v4  ;;  %v1088_v11 = vld [vmem:[%s2805_s5 + $0x8] sm:$0xff] (!%p1678_p5) }
 0x172   : > { %786 = vst.msk [vmem:[#allocation2 + $0x10] sm:$0xff] %vm783_vm1, %v769_v13  ;;  %794 = vst.msk [vmem:[#allocation2 + $0x50] sm:$0xff] %vm783_vm1, %v777_v14  ;;  %v1780_v21 = vadd.f32 %v1779_v18, %v1778_v15  ;;  %v1804_v22 = vadd.f32 %v1803_v20, %v1802_v16  ;;  %1891 = vmatprep.mubr.msk.f32.mxu1 (!%p1678_p5), %vm838_vm2, %v828_v5  ;;  %v2003_v12 = vpack.c.bf16 (!%p1678_p5), %v1088_v11, %v1087_v10  ;;  %v823_v13 = vld [vmem:[%s2509_s11 + $0x18] sm:$0xff] (!%p1678_p5)  ;;  %v824_v15 = vld [vmem:[%s2509_s11 + $0x20] sm:$0xff] (!%p1678_p5) }
 0x173   : > { %v831_v14 = vld [vmem:[%s2509_s11 + $0x58] sm:$0xff] (!%p1678_p5)  ;;  %v832_v16 = vld [vmem:[%s2509_s11 + $0x60] sm:$0xff] (!%p1678_p5)  ;;  %v833_v18 = vld [vmem:[%s2509_s11 + $0x68] sm:$0xff] (!%p1678_p5) }
 0x174   : > { %v770_v23 = vadd.f32 %v1780_v21, %v529_v17  ;;  %v778_v24 = vadd.f32 %v1804_v22, %v537_v19  ;;  %v1781_v25 = vpop.f32.mrb[8].mxu0  ;;  %v1805_v26 = vpop.f32.mrb[8].mxu1  ;;  %1880 = vmatmul.mubr.msk.f32.vlgmr.msra.gmra.mrb[0].mxu0 (!%p1678_p5), %vm838_vm2, %v821_v6  ;;  %1892 = vmatmul.mubr.msk.f32.vlgmr.msra.gmra.mrb[0].mxu1 (!%p1678_p5), %vm838_vm2, %v829_v7  ;;  %v825_v17 = vld [vmem:[%s2509_s11 + $0x28] sm:$0xff] (!%p1678_p5)  ;;  %v826_v19 = vld [vmem:[%s2509_s11 + $0x30] sm:$0xff] (!%p1678_p5)  ;;  %v827_v21 = vld [vmem:[%s2509_s11 + $0x38] sm:$0xff] (!%p1678_p5) }
 0x175   : > { %v1782_v28 = vpop.f32.mrb[9].mxu0  ;;  %v1806_v30 = vpop.f32.mrb[9].mxu1  ;;  %1882 = vmatprep.mubr.msk.f32.mxu0 (!%p1678_p5), %vm838_vm2, %v822_v8  ;;  %1894 = vmatprep.mubr.msk.f32.mxu1 (!%p1678_p5), %vm838_vm2, %v830_v9  ;;  %v834_v20 = vld [vmem:[%s2509_s11 + $0x70] sm:$0xff] (!%p1678_p5)  ;;  %v835_v22 = vld [vmem:[%s2509_s11 + $0x78] sm:$0xff] (!%p1678_p5)  ;;  %v813_v9 = vld [vmem:[#allocation2 + $0x48] sm:$0xff] (!%p1678_p5) }
 0x176   : > { %787 = vst.msk [vmem:[#allocation2 + $0x18] sm:$0xff] %vm783_vm1, %v770_v23  ;;  %795 = vst.msk [vmem:[#allocation2 + $0x58] sm:$0xff] %vm783_vm1, %v778_v24  ;;  %v1783_v31 = vadd.f32 %v1782_v28, %v1781_v25  ;;  %v1807_v32 = vadd.f32 %v1806_v30, %v1805_v26  ;;  %2004 = vmatprep.subr.bf16.mxu1 (!%p1678_p5), %v2003_v12  ;;  %v1089_v23 = vld [vmem:[%s2805_s5 + $0x10] sm:$0xff] (!%p1678_p5)  ;;  %v1090_v24 = vld [vmem:[%s2805_s5 + $0x18] sm:$0xff] (!%p1678_p5) }
 0x177   : > { %2006 = vmatpush3.bf16.msra.mxu1 (!%p1678_p5), %v2003_v12  ;;  %v2007_v25 = vpack.c.bf16 (!%p1678_p5), %v1090_v24, %v1089_v23  ;;  %v1307_v26 = vld [vmem:[%s2807_s7] sm:$0xff] (!%p1678_p5)  ;;  %v1309_v28 = vld [vmem:[%s2807_s7 + $0x10] sm:$0xff] (!%p1678_p5)  ;;  %v1310_v30 = vld [vmem:[%s2807_s7 + $0x18] sm:$0xff] (!%p1678_p5) }
 0x178   : > { %v771_v33 = vadd.f32 %v1783_v31, %v530_v27  ;;  %v779_v34 = vadd.f32 %v1807_v32, %v538_v29  ;;  %v1784_v35 = vpop.f32.mrb[10].mxu0  ;;  %v1808_v36 = vpop.f32.mrb[10].mxu1  ;;  %1883 = vmatmul.mubr.msk.f32.gmra.mrb[2].mxu0 (!%p1678_p5), %vm838_vm2, %v823_v13  ;;  %1895 = vmatmul.mubr.msk.f32.gmra.mrb[2].mxu1 (!%p1678_p5), %vm838_vm2, %v831_v14  ;;  %v1308_v27 = vld [vmem:[%s2807_s7 + $0x8] sm:$0xff] (!%p1678_p5)  ;;  %v2015_v31 = vpack.c.bf16 (!%p1678_p5), %v1310_v30, %v1309_v28 }
 0x179   : > { %v1785_v38 = vpop.f32.mrb[11].mxu0  ;;  %v1809_v40 = vpop.f32.mrb[11].mxu1  ;;  %1885 = vmatprep.mubr.msk.f32.mxu0 (!%p1678_p5), %vm838_vm2, %v824_v15  ;;  %1897 = vmatprep.mubr.msk.f32.mxu1 (!%p1678_p5), %vm838_vm2, %v832_v16  ;;  %v2011_v29 = vpack.c.bf16 (!%p1678_p5), %v1308_v27, %v1307_v26  ;;  %v805_v32 = vld [vmem:[#allocation2 + $0x8] sm:$0xff] (!%p1678_p5)  ;;  %v814_v6 = vld [vmem:[#allocation2 + $0x50] sm:$0xff] (!%p1678_p5) }
 0x17a   : > { %788 = vst.msk [vmem:[#allocation2 + $0x20] sm:$0xff] %vm783_vm1, %v771_v33  ;;  %796 = vst.msk [vmem:[#allocation2 + $0x60] sm:$0xff] %vm783_vm1, %v779_v34  ;;  %v1786_v41 = vadd.f32 %v1785_v38, %v1784_v35  ;;  %v1810_v42 = vadd.f32 %v1809_v40, %v1808_v36  ;;  %2008 = vmatprep.subr.bf16.mxu1 (!%p1678_p5), %v2007_v25  ;;  %v804_v33 = vld [vmem:[#allocation2] sm:$0xff] (!%p1678_p5) }
 0x17b   : > { %2010 = vmatpush3.bf16.msra.mxu1 (!%p1678_p5), %v2007_v25  ;;  %2012 = vmatprep.subr.bf16.mxu0 (!%p1678_p5), %v2011_v29  ;;  %v2659_v35 = vld [vmem:[%s2804_s4] ss:$0 sm:$0xff] (!%p1678_p5) }
 0x17c   : > { %v772_v43 = vadd.f32 %v1786_v41, %v531_v37  ;;  %v780_v44 = vadd.f32 %v1810_v42, %v539_v39  ;;  %v1787_v45 = vpop.f32.mrb[12].mxu0  ;;  %v1811_v46 = vpop.f32.mrb[12].mxu1  ;;  %1886 = vmatmul.mubr.msk.f32.gmra.mrb[4].mxu0 (!%p1678_p5), %vm838_vm2, %v825_v17  ;;  %1898 = vmatmul.mubr.msk.f32.gmra.mrb[4].mxu1 (!%p1678_p5), %vm838_vm2, %v833_v18 }
 0x17d   : > { %v1788_v48 = vpop.f32.mrb[13].mxu0  ;;  %v1812_v50 = vpop.f32.mrb[13].mxu1  ;;  %1888 = vmatprep.mubr.msk.f32.mxu0 (!%p1678_p5), %vm838_vm2, %v826_v19  ;;  %1900 = vmatprep.mubr.msk.f32.mxu1 (!%p1678_p5), %vm838_vm2, %v834_v20  ;;  %v807_v41 = vld [vmem:[#allocation2 + $0x18] sm:$0xff] (!%p1678_p5) }
 0x17e   : > { %789 = vst.msk [vmem:[#allocation2 + $0x28] sm:$0xff] %vm783_vm1, %v772_v43  ;;  %797 = vst.msk [vmem:[#allocation2 + $0x68] sm:$0xff] %vm783_vm1, %v780_v44  ;;  %v1789_v51 = vadd.f32 %v1788_v48, %v1787_v45  ;;  %v1813_v52 = vadd.f32 %v1812_v50, %v1811_v46  ;;  %2014 = vmatpush3.bf16.msra.mxu0 (!%p1678_p5), %v2011_v29  ;;  %v806_v43 = vld [vmem:[#allocation2 + $0x10] sm:$0xff] (!%p1678_p5)  ;;  %v815_v23 = vld [vmem:[#allocation2 + $0x58] sm:$0xff] (!%p1678_p5) }
 0x17f   : > { %2016 = vmatprep.subr.bf16.mxu0 (!%p1678_p5), %v2015_v31 }
 0x180   : > { %v773_v53 = vadd.f32 %v1789_v51, %v532_v47  ;;  %v781_v54 = vadd.f32 %v1813_v52, %v540_v49  ;;  %v1790_v55 = vpop.f32.mrb[14].mxu0  ;;  %v1814_v56 = vpop.f32.mrb[14].mxu1  ;;  %803 = sbr.rel (%p1678_p5) target bundleno = 1054 (0x41e), region = 106  ;;  %1889 = vmatmul.mubr.msk.f32.gmra.mrb[6].mxu0 (!%p1678_p5), %vm838_vm2, %v827_v21  ;;  %1901 = vmatmul.mubr.msk.f32.gmra.mrb[6].mxu1 (!%p1678_p5), %vm838_vm2, %v835_v22 }
 0x181   : > { %v1791_v58 = vpop.f32.mrb[15].mxu0  ;;  %v1815_v60 = vpop.f32.mrb[15].mxu1  ;;  %v816_v21 = vld [vmem:[#allocation2 + $0x60] sm:$0xff] (!%p1678_p5) }
 0x182   : > { %790 = vst.msk [vmem:[#allocation2 + $0x30] sm:$0xff] %vm783_vm1, %v773_v53  ;;  %798 = vst.msk [vmem:[#allocation2 + $0x70] sm:$0xff] %vm783_vm1, %v781_v54  ;;  %v1792_v61 = vadd.f32 %v1791_v58, %v1790_v55  ;;  %v1816_v62 = vadd.f32 %v1815_v60, %v1814_v56  ;;  %2018 = vmatpush3.bf16.msra.mxu0 (!%p1678_p5), %v2015_v31  ;;  %v808_v55 = vld [vmem:[#allocation2 + $0x20] sm:$0xff] (!%p1678_p5) }
 0x183   : > { %v812_v56 = vld [vmem:[#allocation2 + $0x40] sm:$0xff] (!%p1678_p5) }
 0x184   : > { %v774_v63 = vadd.f32 %v1792_v61, %v533_v57  ;;  %v782_v0 = vadd.f32 %v1816_v62, %v541_v59 }
 0x185   : > { %v809_v52 = vld [vmem:[#allocation2 + $0x28] sm:$0xff] (!%p1678_p5) }
 0x186   : > { %791 = vst.msk [vmem:[#allocation2 + $0x38] sm:$0xff] %vm783_vm1, %v774_v63  ;;  %799 = vst.msk [vmem:[#allocation2 + $0x78] sm:$0xff] %vm783_vm1, %v782_v0 }
 0x189   : > { %v810_v5 = vld [vmem:[#allocation2 + $0x30] sm:$0xff] }
 0x18a   : > { %v818_v31 = vld [vmem:[#allocation2 + $0x70] sm:$0xff] }
 0x18d   : > { %v811_v1 = vld [vmem:[#allocation2 + $0x38] sm:$0xff] }
 0x247   : > { %v1881_v34 = vpop.f32.mrb[0].mxu0  ;;  %v1893_v36 = vpop.f32.mrb[0].mxu1 }
 0x248   : > { %v1033_v37 = vadd.f32 %v1881_v34, %v805_v32  ;;  %v953_v38 = vpop.f32.mrb[1].mxu0  ;;  %v993_v39 = vpop.f32.mrb[1].mxu1  ;;  %v1041_v20 = vadd.f32 %v1893_v36, %v813_v9  ;;  %v817_v32 = vld [vmem:[#allocation2 + $0x68] sm:$0xff] }
 0x249   : > { %v1032_v40 = vadd.f32 %v953_v38, %v804_v33  ;;  %v1040_v2 = vadd.f32 %v993_v39, %v812_v56 }
 0x24a   : > { %v1056_v42 = vadd.f32 %v2659_v35, %v1033_v37  ;;  %v1064_v29 = vadd.f32 %v2659_v35, %v1041_v20 }
 0x24b   : > { %v1055_v44 = vadd.f32 %v2659_v35, %v1032_v40  ;;  %v1884_v45 = vpop.f32.mrb[2].mxu0  ;;  %v1896_v46 = vpop.f32.mrb[2].mxu1  ;;  %v1063_v16 = vadd.f32 %v2659_v35, %v1040_v2  ;;  %v819_v40 = vld [vmem:[#allocation2 + $0x78] sm:$0xff] }
 0x24c   : > { %v1035_v47 = vadd.f32 %v1884_v45, %v807_v41  ;;  %v963_v48 = vpop.f32.mrb[3].mxu0  ;;  %v1003_v49 = vpop.f32.mrb[3].mxu1  ;;  %v1072_v53 = vmax.f32 %v1056_v42, 0.0  ;;  %v1043_v30 = vadd.f32 %v1896_v46, %v815_v23  ;;  %v1080_v37 = vmax.f32 %v1064_v29, 0.0 }
 0x24d   : > { %v1071_v50 = vmax.f32 %v1055_v44, 0.0  ;;  %v1034_v51 = vadd.f32 %v963_v48, %v806_v43  ;;  %v1042_v17 = vadd.f32 %v1003_v49, %v814_v6  ;;  %v1079_v25 = vmax.f32 %v1063_v16, 0.0 }
 0x24e   : > { %v1058_v54 = vadd.f32 %v2659_v35, %v1035_v47  ;;  %v1066_v38 = vadd.f32 %v2659_v35, %v1043_v30 }
 0x24f   : > { %v1057_v57 = vadd.f32 %v2659_v35, %v1034_v51  ;;  %v1887_v58 = vpop.f32.mrb[4].mxu0  ;;  %1911 = vmatprep.mubr.msk.f32.mxu1 %vm783_vm1, %v1071_v50  ;;  %v1899_v59 = vpop.f32.mrb[4].mxu1  ;;  %v1065_v26 = vadd.f32 %v2659_v35, %v1042_v17  ;;  %v1696_v50 = vld [vmem:[%s2842_s27] ss:$0 sm:$0xff] }
 0x250   : > { %v1037_v60 = vadd.f32 %v1887_v58, %v809_v52  ;;  %v973_v61 = vpop.f32.mrb[5].mxu0  ;;  %1912 = vmatmul.mubr.msk.f32.vlgmr.msra.gmra.mrb[8].mxu1 %vm783_vm1, %v1072_v53  ;;  %v1013_v62 = vpop.f32.mrb[5].mxu1  ;;  %v1074_v3 = vmax.f32 %v1058_v54, 0.0  ;;  %v1045_v39 = vadd.f32 %v1899_v59, %v817_v32  ;;  %v1082_v43 = vmax.f32 %v1066_v38, 0.0 }
 0x251   : > { %v1073_v63 = vmax.f32 %v1057_v57, 0.0  ;;  %v1036_v0 = vadd.f32 %v973_v61, %v808_v55  ;;  %v1044_v27 = vadd.f32 %v1013_v62, %v816_v21  ;;  %v1081_v33 = vmax.f32 %v1065_v26, 0.0 }
 0x252   : > { %v1060_v4 = vadd.f32 %v2659_v35, %v1037_v60  ;;  %v1068_v44 = vadd.f32 %v2659_v35, %v1045_v39 }
 0x253   : > { %v1059_v7 = vadd.f32 %v2659_v35, %v1036_v0  ;;  %v1890_v8 = vpop.f32.mrb[6].mxu0  ;;  %1914 = vmatprep.mubr.msk.f32.mxu1 %vm783_vm1, %v1073_v63  ;;  %v1902_v10 = vpop.f32.mrb[6].mxu1  ;;  %v1067_v34 = vadd.f32 %v2659_v35, %v1044_v27 }
 0x254   : > { %v1039_v11 = vadd.f32 %v1890_v8, %v811_v1  ;;  %v983_v12 = vpop.f32.mrb[7].mxu0  ;;  %1915 = vmatmul.mubr.msk.f32.gmra.mrb[10].mxu1 %vm783_vm1, %v1074_v3  ;;  %v1023_v13 = vpop.f32.mrb[7].mxu1  ;;  %v1076_v18 = vmax.f32 %v1060_v4, 0.0  ;;  %v1047_v45 = vadd.f32 %v1902_v10, %v819_v40  ;;  %v1084_v47 = vmax.f32 %v1068_v44, 0.0 }
 0x255   : > { %v1075_v14 = vmax.f32 %v1059_v7, 0.0  ;;  %v1038_v15 = vadd.f32 %v983_v12, %v810_v5  ;;  %v1046_v36 = vadd.f32 %v1023_v13, %v818_v31  ;;  %v1083_v41 = vmax.f32 %v1067_v34, 0.0  ;;  %v1713_v34 = vld [vmem:[%s2843_s22] ss:$0 sm:$0xff] }
 0x256   : > { %v1062_v19 = vadd.f32 %v2659_v35, %v1039_v11  ;;  %v1070_v48 = vadd.f32 %v2659_v35, %v1047_v45 }
 0x257   : > { %v1061_v22 = vadd.f32 %v2659_v35, %v1038_v15  ;;  %1917 = vmatprep.mubr.msk.f32.mxu1 %vm783_vm1, %v1075_v14  ;;  %v1069_v42 = vadd.f32 %v2659_v35, %v1046_v36 }
 0x258   : > { %1918 = vmatmul.mubr.msk.f32.gmra.mrb[12].mxu1 %vm783_vm1, %v1076_v18  ;;  %v1078_v28 = vmax.f32 %v1062_v19, 0.0  ;;  %v1086_v49 = vmax.f32 %v1070_v48, 0.0 }
 0x259   : > { %v1077_v24 = vmax.f32 %v1061_v22, 0.0  ;;  %v1085_v46 = vmax.f32 %v1069_v42, 0.0 }
 0x25b   : > { %1920 = vmatprep.mubr.msk.f32.mxu1 %vm783_vm1, %v1077_v24 }
 0x25c   : > { %1921 = vmatmul.mubr.msk.f32.gmra.mrb[14].mxu1 %vm783_vm1, %v1078_v28 }
 0x25d   : > { %1923 = vmatprep.mubr.msk.f32.mxu1 %vm783_vm1, %v1079_v25 }
 0x260   : > { %1924 = vmatmul.mubr.msk.f32.gmra.mrb[16].mxu1 %vm783_vm1, %v1080_v37 }
 0x261   : > { %1926 = vmatprep.mubr.msk.f32.mxu1 %vm783_vm1, %v1081_v33 }
 0x264   : > { %1927 = vmatmul.mubr.msk.f32.gmra.mrb[18].mxu1 %vm783_vm1, %v1082_v43 }
 0x265   : > { %1929 = vmatprep.mubr.msk.f32.mxu1 %vm783_vm1, %v1083_v41 }
 0x268   : > { %1930 = vmatmul.mubr.msk.f32.gmra.mrb[20].mxu1 %vm783_vm1, %v1084_v47 }
 0x269   : > { %1932 = vmatprep.mubr.msk.f32.mxu1 %vm783_vm1, %v1085_v46 }
 0x26c   : > { %1933 = vmatmul.mubr.msk.f32.gmra.mrb[22].mxu1 %vm783_vm1, %v1086_v49 }
 0x323   : > { %v1913_v51 = vpop.f32.mrb[8].mxu1 }
 0x324   : > { %v1218_v52 = vadd.f32 %v1913_v51, %v1696_v50  ;;  %v1212_v53 = vpop.f32.mrb[9].mxu1 }
 0x325   : > { %v1213_v54 = vadd.f32 %v1696_v50, %v1212_v53 }
 0x326   : > { %v1292_v57 = vmax.f32 %v1218_v52, 0.0 }
 0x327   : > { %v1291_v55 = vmax.f32 %v1213_v54, 0.0  ;;  %v1916_v56 = vpop.f32.mrb[10].mxu1 }
 0x328   : > { %v1228_v58 = vadd.f32 %v1916_v56, %v1696_v50  ;;  %v1222_v35 = vpop.f32.mrb[11].mxu1 }
 0x329   : > { %v1223_v59 = vadd.f32 %v1696_v50, %v1222_v35  ;;  %1943 = vmatprep.mubr.msk.f32.mxu0 %vm783_vm1, %v1291_v55 }
 0x32a   : > { %1944 = vmatmul.mubr.msk.f32.vlgmr.msra.gmra.mrb[8].mxu0 %vm783_vm1, %v1292_v57  ;;  %v1294_v62 = vmax.f32 %v1228_v58, 0.0 }
 0x32b   : > { %v1293_v60 = vmax.f32 %v1223_v59, 0.0  ;;  %v1919_v61 = vpop.f32.mrb[12].mxu1 }
 0x32c   : > { %v1238_v63 = vadd.f32 %v1919_v61, %v1696_v50  ;;  %v1232_v0 = vpop.f32.mrb[13].mxu1 }
 0x32d   : > { %v1233_v1 = vadd.f32 %v1696_v50, %v1232_v0  ;;  %1946 = vmatprep.mubr.msk.f32.mxu0 %vm783_vm1, %v1293_v60 }
 0x32e   : > { %1947 = vmatmul.mubr.msk.f32.gmra.mrb[10].mxu0 %vm783_vm1, %v1294_v62  ;;  %v1296_v4 = vmax.f32 %v1238_v63, 0.0 }
 0x32f   : > { %v1295_v2 = vmax.f32 %v1233_v1, 0.0  ;;  %v1922_v3 = vpop.f32.mrb[14].mxu1 }
 0x330   : > { %v1248_v5 = vadd.f32 %v1922_v3, %v1696_v50  ;;  %v1242_v6 = vpop.f32.mrb[15].mxu1 }
 0x331   : > { %v1243_v7 = vadd.f32 %v1696_v50, %v1242_v6  ;;  %1949 = vmatprep.mubr.msk.f32.mxu0 %vm783_vm1, %v1295_v2 }
 0x332   : > { %1950 = vmatmul.mubr.msk.f32.gmra.mrb[12].mxu0 %vm783_vm1, %v1296_v4  ;;  %v1298_v10 = vmax.f32 %v1248_v5, 0.0 }
 0x333   : > { %v1297_v8 = vmax.f32 %v1243_v7, 0.0  ;;  %v1925_v9 = vpop.f32.mrb[16].mxu1 }
 0x334   : > { %v1258_v11 = vadd.f32 %v1925_v9, %v1696_v50  ;;  %v1252_v12 = vpop.f32.mrb[17].mxu1 }
 0x335   : > { %v1253_v13 = vadd.f32 %v1696_v50, %v1252_v12  ;;  %1952 = vmatprep.mubr.msk.f32.mxu0 %vm783_vm1, %v1297_v8 }
 0x336   : > { %1953 = vmatmul.mubr.msk.f32.gmra.mrb[14].mxu0 %vm783_vm1, %v1298_v10  ;;  %v1300_v16 = vmax.f32 %v1258_v11, 0.0 }
 0x337   : > { %v1299_v14 = vmax.f32 %v1253_v13, 0.0  ;;  %v1928_v15 = vpop.f32.mrb[18].mxu1 }
 0x338   : > { %v1268_v17 = vadd.f32 %v1928_v15, %v1696_v50  ;;  %v1262_v18 = vpop.f32.mrb[19].mxu1 }
 0x339   : > { %v1263_v19 = vadd.f32 %v1696_v50, %v1262_v18  ;;  %1955 = vmatprep.mubr.msk.f32.mxu0 %vm783_vm1, %v1299_v14 }
 0x33a   : > { %1956 = vmatmul.mubr.msk.f32.gmra.mrb[16].mxu0 %vm783_vm1, %v1300_v16  ;;  %v1302_v22 = vmax.f32 %v1268_v17, 0.0 }
 0x33b   : > { %v1301_v20 = vmax.f32 %v1263_v19, 0.0  ;;  %v1931_v21 = vpop.f32.mrb[20].mxu1 }
 0x33c   : > { %v1278_v23 = vadd.f32 %v1931_v21, %v1696_v50  ;;  %v1272_v24 = vpop.f32.mrb[21].mxu1 }
 0x33d   : > { %v1273_v25 = vadd.f32 %v1696_v50, %v1272_v24  ;;  %1958 = vmatprep.mubr.msk.f32.mxu0 %vm783_vm1, %v1301_v20 }
 0x33e   : > { %1959 = vmatmul.mubr.msk.f32.gmra.mrb[18].mxu0 %vm783_vm1, %v1302_v22  ;;  %v1304_v28 = vmax.f32 %v1278_v23, 0.0 }
 0x33f   : > { %v1303_v26 = vmax.f32 %v1273_v25, 0.0  ;;  %v1934_v27 = vpop.f32.mrb[22].mxu1 }
 0x340   : > { %v1288_v29 = vadd.f32 %v1934_v27, %v1696_v50  ;;  %v1282_v30 = vpop.f32.mrb[23].mxu1 }
 0x341   : > { %v1283_v31 = vadd.f32 %v1696_v50, %v1282_v30  ;;  %1961 = vmatprep.mubr.msk.f32.mxu0 %vm783_vm1, %v1303_v26 }
 0x342   : > { %1962 = vmatmul.mubr.msk.f32.gmra.mrb[20].mxu0 %vm783_vm1, %v1304_v28  ;;  %v1306_v33 = vmax.f32 %v1288_v29, 0.0 }
 0x343   : > { %v1305_v32 = vmax.f32 %v1283_v31, 0.0 }
 0x345   : > { %1964 = vmatprep.mubr.msk.f32.mxu0 %vm783_vm1, %v1305_v32 }
 0x346   : > { %1965 = vmatmul.mubr.msk.f32.gmra.mrb[22].mxu0 %vm783_vm1, %v1306_v33 }
 0x3fd   : > { %v1945_v36 = vpop.f32.mrb[8].mxu0 }
 0x3fe   : > { %v1438_v37 = vadd.f32 %v1945_v36, %v1713_v34  ;;  %v1432_v38 = vpop.f32.mrb[9].mxu0 }
 0x3ff   : > { %v1433_v39 = vadd.f32 %v1713_v34, %v1432_v38 }
 0x400   : > { %1512 = vst [vmem:[%s2516_s19 + $0x8] sm:$0xff] %v1438_v37 }
 0x401   : > { %1511 = vst [vmem:[%s2516_s19] sm:$0xff] %v1433_v39  ;;  %v1948_v40 = vpop.f32.mrb[10].mxu0 }
 0x402   : > { %v1448_v41 = vadd.f32 %v1948_v40, %v1713_v34  ;;  %v1442_v42 = vpop.f32.mrb[11].mxu0 }
 0x403   : > { %v1443_v43 = vadd.f32 %v1713_v34, %v1442_v42 }
 0x404   : > { %1514 = vst [vmem:[%s2516_s19 + $0x18] sm:$0xff] %v1448_v41 }
 0x405   : > { %1513 = vst [vmem:[%s2516_s19 + $0x10] sm:$0xff] %v1443_v43  ;;  %v1951_v44 = vpop.f32.mrb[12].mxu0 }
 0x406   : > { %v1458_v45 = vadd.f32 %v1951_v44, %v1713_v34  ;;  %v1452_v46 = vpop.f32.mrb[13].mxu0 }
 0x407   : > { %v1453_v47 = vadd.f32 %v1713_v34, %v1452_v46 }
 0x408   : > { %1516 = vst [vmem:[%s2516_s19 + $0x28] sm:$0xff] %v1458_v45 }
 0x409   : > { %1515 = vst [vmem:[%s2516_s19 + $0x20] sm:$0xff] %v1453_v47  ;;  %v1954_v48 = vpop.f32.mrb[14].mxu0 }
 0x40a   : > { %v1468_v49 = vadd.f32 %v1954_v48, %v1713_v34  ;;  %v1462_v50 = vpop.f32.mrb[15].mxu0 }
 0x40b   : > { %v1463_v51 = vadd.f32 %v1713_v34, %v1462_v50 }
 0x40c   : > { %1518 = vst [vmem:[%s2516_s19 + $0x38] sm:$0xff] %v1468_v49 }
 0x40d   : > { %1517 = vst [vmem:[%s2516_s19 + $0x30] sm:$0xff] %v1463_v51  ;;  %v1957_v52 = vpop.f32.mrb[16].mxu0 }
 0x40e   : > { %v1478_v53 = vadd.f32 %v1957_v52, %v1713_v34  ;;  %v1472_v54 = vpop.f32.mrb[17].mxu0 }
 0x40f   : > { %v1473_v55 = vadd.f32 %v1713_v34, %v1472_v54 }
 0x410   : > { %1520 = vst [vmem:[%s2516_s19 + $0x48] sm:$0xff] %v1478_v53 }
 0x411   : > { %1519 = vst [vmem:[%s2516_s19 + $0x40] sm:$0xff] %v1473_v55  ;;  %v1960_v56 = vpop.f32.mrb[18].mxu0 }
 0x412   : > { %v1488_v57 = vadd.f32 %v1960_v56, %v1713_v34  ;;  %v1482_v58 = vpop.f32.mrb[19].mxu0 }
 0x413   : > { %v1483_v35 = vadd.f32 %v1713_v34, %v1482_v58 }
 0x414   : > { %1522 = vst [vmem:[%s2516_s19 + $0x58] sm:$0xff] %v1488_v57 }
 0x415   : > { %1521 = vst [vmem:[%s2516_s19 + $0x50] sm:$0xff] %v1483_v35  ;;  %v1963_v59 = vpop.f32.mrb[20].mxu0 }
 0x416   : > { %v1498_v60 = vadd.f32 %v1963_v59, %v1713_v34  ;;  %v1492_v61 = vpop.f32.mrb[21].mxu0 }
 0x417   : > { %v1493_v62 = vadd.f32 %v1713_v34, %v1492_v61 }
 0x418   : > { %1524 = vst [vmem:[%s2516_s19 + $0x68] sm:$0xff] %v1498_v60 }
 0x419   : > { %1523 = vst [vmem:[%s2516_s19 + $0x60] sm:$0xff] %v1493_v62  ;;  %v1966_v63 = vpop.f32.mrb[22].mxu0 }
 0x41a   : > { %v1508_v0 = vadd.f32 %v1966_v63, %v1713_v34  ;;  %v1502_v1 = vpop.f32.mrb[23].mxu0 }
 0x41b   : > { %v1503_v2 = vadd.f32 %v1713_v34, %v1502_v1 }
 0x41c   : > { %1526 = vst [vmem:[%s2516_s19 + $0x78] sm:$0xff] %v1508_v0 }
 0x41d   : > { %1525 = vst [vmem:[%s2516_s19 + $0x70] sm:$0xff] %v1503_v2 }
 0x41e PF: > { %s2844_s12 = sld [smem:[#allocation14_spill]]  ;;  %s1736_s26 = sshll.u32 %s2270_s15, 11 }
 0x41f   : > { %s2845_s6 = sld [smem:[#allocation20_spill]]  ;;  %s1541_s24 = sshll.u32 %s2516_s19, 4  ;;  %s2738_s24 = int_to_ptr.vmem [resolvable:$true] %s1541_s24 }
 0x420   : > { %s2742_s23 = scalar_lea.sflag [#allocation6], %s487_s28  ;;  %s2168_s14 = scalar_lea.vmem %s2738_s24, 2048 }
 0x421   : > { %p2169_p8 = scmp.ne.s32.totalorder %s2738_s24, %s2168_s14  ;;  %s2288_s15 = smov [#allocation7]  }
 0x422   : > { %s2172_s25 = sshll.u32 %s2288_s15, 4  ;;  %s2173_s25 = int_to_ptr.vmem [resolvable:$false] %s2172_s25 }
 0x423   : > { %s2174_s30 = scalar_lea.vmem %s2173_s25, 4096  ;;  %p2175_p0 = scmp.lt.s32.totalorder %s2738_s24, %s2173_s25 }
 0x424   : > { %p2846_p10 = scmp.ne.s32.totalorder %s2844_s12, 0  ;;  %p2176_p4 = scmp.lt.s32.totalorder %s2174_s30, %s2168_s14 }
 0x425   : > { %s2735_s29 = scalar_lea.hbm %s2845_s6, %s1736_s26 }
 0x426   : > { %p2170_p11 = pnand %p2169_p8, %p2846_p10  ;;  %p2177_p6 = por %p2176_p4, %p2175_p0 }
 0x428   : > { %p2171_p13 = pneg %p2170_p11 }
 0x42a   : > { %p2178_p9 = pnand %p2177_p6, %p2171_p13 }
 0x42c   : > { %2181 = shalt.err (!%p2178_p9)
}
 0x42d   : > { %s2182_s28 = scalar_lea.hbm %s2735_s29, 2048  ;;  %s2186_s27 = scalar_lea.hbm %s2845_s6, 8192 }
 0x42e   : > { %p2183_p3 = scmp.ne.s32.totalorder %s2735_s29, %s2182_s28  ;;  %p2187_p1 = scmp.lt.u32.totalorder %s2735_s29, %s2845_s6 }
 0x42f   : > { %p2188_p2 = scmp.lt.u32.totalorder %s2186_s27, %s2182_s28  ;;  %p2190_p8 = scmp.lt.u32.totalorder %s2182_s28, %s2735_s29 }
 0x430   : > { %p2184_p7 = pnand %p2183_p3, %p2846_p10 }
 0x431   : > { %p2189_p5 = por %p2188_p2, %p2187_p1 }
 0x432   : > { %p2185_p12 = pneg %p2184_p7 }
 0x433   : > { %p2191_p11 = por %p2190_p8, %p2189_p5 }
 0x435   : > { %p2192_p13 = pnand %p2191_p11, %p2185_p12 }
 0x437   : > { %2195 = shalt.err (!%p2192_p13)
}
 0x438   : > { %s2289_s22 = smov 128   ;;  %s2290_s26 = smov 8  }
 0x439   : > { %2041 = dma.vmem_to_hbm [thread:$0]  (%p2846_p10), %s2738_s24, 2048, %s2735_s29, %s2742_s23, %s2289_s22, %s2289_s22, %s2290_s26  }
 0x43a PF: > { %s2847_s9 = sld [smem:[#allocation10_spill]]  ;;  %s2848_s11 = sld [smem:[#allocation15_spill]] }
 0x43b   : > { %p2053_p0 = scmp.ge.s32.totalorder %s2282_s18, 2 }
 0x440   : > { %s1556_s14 = sand.u32 1, %s2847_s9   ;;  %p2849_p4 = scmp.ne.s32.totalorder %s2848_s11, 0 }
 0x441   : > { %s1557_s15 = scalar_lea.sflag [#allocation6], %s1556_s14 }
 0x442   : > { %p2048_p6 = pnand %p2053_p0, %p2849_p4 }
 0x444   : > { %2241 = dma.done.wait (!%p2048_p6), %s1557_s15, 2048  }
 0x445   : > { %2243 = vsyncadd (!%p2048_p6), %s1557_s15, 4294965248  ;;  %s23_s18 = sadd.s32 1, %s2282_s18   ;;  %s2850_s25 = sld [smem:[#allocation11_spill]] }
 0x446   : > { %p20_p9 = scmp.ge.s32.totalorder %s23_s18, 10   ;;  %s2851_s11 = sld [smem:[#allocation16_spill]] }
 0x447   : > { %s2852_s28 = sld [smem:[#allocation17_spill]]  ;;  %s2853_s29 = sld [smem:[#allocation12_spill]] }
 0x448   : > { %s2854_s24 = sld [smem:[#allocation13_spill]]  ;;  %s2855_s30 = smov %s2250_s10 }
 0x449   : > { %s2857_s12 = smov %s2262_s13  ;;  %s2859_s14 = smov %s2274_s16 }
 0x44a   : > { %s2860_s15 = smov %s2278_s17  ;;  %22 = sbr.rel (!%p20_p9) target bundleno = 11 (0xb), region = 153 }
 0x44b   : > { %s2856_s10 = smov %s2850_s25 }
 0x44d   : > { %s2858_s13 = smov %s2852_s28  ;;  %s2861_s16 = smov %s2853_s29 }
 0x44e   : > { %s2862_s17 = smov %s2854_s24 }
 0x451   :  { %1562 = vsyncpa [#allocation5], 1 }
 0x452   :  { %1564 = vsyncpa [#allocation5 + $0x1], 1 }
 0x453   :  { %1565 = vsyncpa [#allocation6], 1 }
 0x454   :  { %1567 = vsyncpa [#allocation6 + $0x1], 1 }

</bundles_post_ra>
